<compile_context>
chip_gen: v6e
topology: v6e:2x2x1
jax: 0.10.0
libtpu: 0.0.40
codegen_flags: <defaults>
</compile_context>

<pallas_src>
import jax
import jax.numpy as jnp
from jax.experimental import pallas as pl
from jax.experimental.pallas import tpu as pltpu

BLOCK_N = 1024  # lane-dense batch tile (multiple of 128); ~12 KiB/block in VMEM


def logistic_kernel(params_ref, x_ref, o_ref):
    """params_ref: SMEM (3,) f32 = [w0, w1, b]
       x_ref:      VMEM (2, BLOCK_N) f32  (feature-major, batch on lanes)
       o_ref:      VMEM (1, BLOCK_N) f32  (lane-dense output slab)
    """
    w0 = params_ref[0]
    w1 = params_ref[1]
    b = params_ref[2]
    x = x_ref[...]                                   # (2, BLOCK_N)
    # Linear(2, 1) as two VPU multiply-adds -- no MXU for a K=2 matmul.
    z = w0 * x[0:1, :] + w1 * x[1:2, :] + b          # (1, BLOCK_N)
    # sigmoid(z) = 1 / (1 + exp(-z)); exp and reciprocal both run on the EUP.
    o_ref[...] = pl.reciprocal(1.0 + jnp.exp(-z), approx=True)


def binary_classifier_forward(x, weight, bias):
    """x: (N, 2) f32, weight: (1, 2) f32, bias: (1,) f32 -> (N, 1) f32."""
    n = x.shape[0]
    x = x.astype(jnp.float32)

    # Lane-dense layout: (N, 2) -> (2, N_pad). Padded tail samples produce
    # sigmoid(b) in the padded region of the output, which is dropped below.
    n_pad = ((n + BLOCK_N - 1) // BLOCK_N) * BLOCK_N
    x_t = jnp.pad(x.T, ((0, 0), (0, n_pad - n)))                      # (2, n_pad)

    # 12 bytes of parameters -> SMEM scalars (no padded VMEM tile, no DMA tile).
    params = jnp.concatenate(
        [weight.reshape(-1), bias.reshape(-1)]).astype(jnp.float32)   # (3,)

    out = pl.pallas_call(
        logistic_kernel,
        out_shape=jax.ShapeDtypeStruct((1, n_pad), jnp.float32),
        grid=(n_pad // BLOCK_N,),
        in_specs=[
            pl.BlockSpec(memory_space=pltpu.MemorySpace.SMEM),        # params
            pl.BlockSpec((2, BLOCK_N), lambda i: (0, i)),             # x tiles
        ],
        out_specs=pl.BlockSpec((1, BLOCK_N), lambda i: (0, i)),
        compiler_params=pltpu.CompilerParams(
            dimension_semantics=("parallel",)),   # shard batch across TCs (v7x)
        cost_estimate=pl.CostEstimate(
            flops=5 * n_pad,
            transcendentals=2 * n_pad,
            bytes_accessed=12 * n_pad),
    )(params, x_t)

    # Back to the PyTorch (N, 1) layout; padded tail is discarded here.
    return out[0, :n][:, None]
    # TODO(synk): optional bf16 streaming of x on v6e/v7x for ~2x HBM savings
    # (kept f32 everywhere for v5e compatibility and bitwise-stable accuracy).


if __name__ == "__main__":
    key = jax.random.PRNGKey(0)
    kx, kw, kb = jax.random.split(key, 3)

    # Small batch of 8 samples with 2 features each (nn.Linear(2, 1)).
    x = jax.random.normal(kx, (8, 2), dtype=jnp.float32)

    # Deterministic params mimicking PyTorch's default
    # U(-1/sqrt(in_features), 1/sqrt(in_features)) for nn.Linear(2, 1).
    bound = 1.0 / jnp.sqrt(2.0)
    weight = jax.random.uniform(kw, (1, 2), minval=-bound, maxval=bound,
                                dtype=jnp.float32)
    bias = jax.random.uniform(kb, (1,), minval=-bound, maxval=bound,
                              dtype=jnp.float32)

    out = binary_classifier_forward(x, weight, bias)
    out = jax.block_until_ready(out)

    # Pure-JAX reference check (approx EUP reciprocal -> slightly relaxed tol).
    ref = jax.nn.sigmoid(x @ weight.T + bias)
    assert out.shape == (8, 1)
    assert jnp.allclose(out, ref, atol=2e-3, rtol=2e-3), "mismatch vs reference"

    print("KERNEL_OK")
</pallas_src>

<mosaic_0001>
module attributes {stable_mosaic.version = 11 : i64} {
  func.func @logistic_kernel(%arg0: i32, %arg1: memref<3xf32, #tpu.memory_space<smem>>, %arg2: memref<2x1024xf32, #tpu.memory_space<vmem>>, %arg3: memref<1x1024xf32, #tpu.memory_space<vmem>>) attributes {dimension_semantics = [#tpu.dimension_semantics<parallel>], iteration_bounds = array<i64: 1>, scalar_prefetch = 0 : i64, scratch_operands = 0 : i64, tpu.core_type = #tpu.core_type<tc>, window_params = [{transform_indices = @transform_0, window_bounds = array<i64: 3>}, {transform_indices = @transform_1, window_bounds = array<i64: 2, 1024>}, {transform_indices = @transform_2, window_bounds = array<i64: 1, 1024>}]} {
    %c0 = arith.constant 0 : index
    %0 = memref.load %arg1[%c0] : memref<3xf32, #tpu.memory_space<smem>>
    %c1 = arith.constant 1 : index
    %1 = memref.load %arg1[%c1] : memref<3xf32, #tpu.memory_space<smem>>
    %c2 = arith.constant 2 : index
    %2 = memref.load %arg1[%c2] : memref<3xf32, #tpu.memory_space<smem>>
    %c0_0 = arith.constant 0 : index
    %c0_1 = arith.constant 0 : index
    %3 = vector.load %arg2[%c0_0, %c0_1] : memref<2x1024xf32, #tpu.memory_space<vmem>>, vector<2x1024xf32>
    %4 = vector.extract_strided_slice %3 {offsets = [0, 0], sizes = [1, 1024], strides = [1, 1]} : vector<2x1024xf32> to vector<1x1024xf32>
    %5 = vector.broadcast %0 : f32 to vector<1x1024xf32>
    %6 = arith.mulf %5, %4 : vector<1x1024xf32>
    %7 = vector.extract_strided_slice %3 {offsets = [1, 0], sizes = [1, 1024], strides = [1, 1]} : vector<2x1024xf32> to vector<1x1024xf32>
    %8 = vector.broadcast %1 : f32 to vector<1x1024xf32>
    %9 = arith.mulf %8, %7 : vector<1x1024xf32>
    %10 = arith.addf %6, %9 : vector<1x1024xf32>
    %11 = vector.broadcast %2 : f32 to vector<1x1024xf32>
    %12 = arith.addf %10, %11 : vector<1x1024xf32>
    %cst = arith.constant 0.000000e+00 : f32
    %13 = vector.broadcast %cst : f32 to vector<1x1024xf32>
    %14 = arith.subf %13, %12 : vector<1x1024xf32>
    %15 = math.exp %14 : vector<1x1024xf32>
    %cst_2 = arith.constant 1.000000e+00 : f32
    %16 = vector.broadcast %cst_2 : f32 to vector<1x1024xf32>
    %17 = arith.addf %16, %15 : vector<1x1024xf32>
    %18 = tpu.reciprocal %17 {approx = true} : vector<1x1024xf32> -> vector<1x1024xf32>
    %c0_3 = arith.constant 0 : index
    %c0_4 = arith.constant 0 : index
    %19 = vector.load %arg3[%c0_3, %c0_4] : memref<1x1024xf32, #tpu.memory_space<vmem>>, vector<1x1024xf32>
    tpu.vector_store %arg3[%c0_3, %c0_4], %18 {strides = array<i32>} : memref<1x1024xf32, #tpu.memory_space<vmem>>, vector<1x1024xf32>,
    return
  }
  func.func @transform_0(%arg0: i32) -> i32 {
    %c0_i32 = arith.constant 0 : i32
    %c0_i32_0 = arith.constant 0 : i32
    return %c0_i32 : i32
  }
  func.func @transform_1(%arg0: i32) -> (i32, i32) {
    %c0_i32 = arith.constant 0 : i32
    %c0_i32_0 = arith.constant 0 : i32
    return %c0_i32, %arg0 : i32, i32
  }
  func.func @transform_2(%arg0: i32) -> (i32, i32) {
    %c0_i32 = arith.constant 0 : i32
    %c0_i32_0 = arith.constant 0 : i32
    return %c0_i32, %arg0 : i32, i32
  }
}

</mosaic_0001>

<bundles_post_ra>
// kernel: tpu_custom_call.1
= control target key start
LH: loop header
LB: loop body
LE: loop exit
PB: predicated region body
PF: predicated region fallthrough
CT: control target
= control target key end

     0   :  { %7 = vsyncpa [#allocation5], 0  ;;  %s202_s0 = inlined_call_operand.hbm [shape: f32[3], index: 0, kind: input, shape index: {}]   ;;  %s203_s1 = inlined_call_operand.hbm [shape: f32[2,1024], index: 1, kind: input, shape index: {}]   ;;  %s204_s2 = inlined_call_operand.hbm [shape: f32[1,1024], index: 2, kind: output, shape index: {}]  }
   0x1   :  { %8 = vsyncpa [#allocation3], 0 }
   0x2   :  { %9 = vsyncpa [#allocation4], 0  ;;  %s174_s9 = smov [#allocation2]   ;;  %s175_s12 = smov [#allocation6]  }
   0x3   :  { %17 = dma.hbm_to_smem %s202_s0, 16, %s174_s9, [#allocation5]  }
   0x4   :  { %s24_s13 = sshll.u32 %s175_s12, 4  ;;  %s25_s13 = int_to_ptr.vmem [resolvable:$true] %s24_s13 }
   0x5   :  { %s136_s14 = scalar_lea.vmem %s25_s13, 256  ;;  %p141_p1 = scmp.lt.s32.totalorder %s25_s13, %s25_s13 }
   0x6   :  { %p137_p0 = scmp.ne.s32.totalorder %s25_s13, %s136_s14  ;;  %p142_p2 = scmp.lt.s32.totalorder %s136_s14, %s136_s14 }
   0x8   :  { %p143_p3 = por %p142_p2, %p141_p1 }
   0xa   :  { %p144_p4 = pnand %p143_p3, %p137_p0 }
   0xc   :  { %147 = shalt.err (!%p144_p4)
}
   0xd   :  { %27 = dma.hbm_to_vmem [thread:$0]  %s203_s1, 256, %s25_s13, [#allocation3]  }
   0xe   :  { %168 = dma.done.wait [#allocation5], 16  }
   0xf   :  { %169 = vsyncadd [#allocation5], 4294967280 }
  0x10   :  { %170 = dma.done.wait [#allocation3], 256  }
  0x11   :  { %171 = vsyncadd [#allocation3], 4294967040 }
  0x12   :  { %34 = sfence }
  0x13   :  { %s35_s0 = sld [smem:[#allocation2]]  ;;  %v38_v0 = vld [vmem:[#allocation6] sm:$0xff]  ;;  %v39_v1 = vld [vmem:[#allocation6 + $0x8] sm:$0xff]  ;;  %v176_v23 = vmov 1966171168   ;;  %v74_v25 = vlaneseq  ;;  %s177_s1 = smov [#allocation7]  }
  0x14   :  { %s104_s17 = sld [smem:[#allocation2 + $0x1]]  ;;  %v72_v24 = vunpack.c.l.s4 %v176_v23  ;;  %s94_s19 = sshll.u32 %s177_s1, 4  ;;  %s95_s19 = int_to_ptr.vmem [resolvable:$true] %s94_s19 }
  0x15   :  { %s105_s18 = sld [smem:[#allocation2 + $0x2]]  ;;  %v75_v27 = vshrl.u32 %v74_v25, 7  ;;  %s148_s20 = scalar_lea.vmem %s95_s19, 128 }
  0x16   :  { %v73_v26 = vunpack.c.0.s8 %v72_v24  ;;  %p149_p5 = scmp.ne.s32.totalorder %s95_s19, %s148_s20  ;;  %p153_p6 = scmp.lt.s32.totalorder %s95_s19, %s95_s19 }
  0x17   :  { %p154_p7 = scmp.lt.s32.totalorder %s148_s20, %s148_s20 }
  0x18   :  { %v76_v28 = vsub.s32 %v73_v26, %v75_v27 }
  0x19   :  { %v40_v2 = vstv %s35_s0  ;;  %p155_p8 = por %p154_p7, %p153_p6 }
  0x1a   :  { %v43_v3 = vstv %s104_s17  ;;  %v41_v4 = vmul.f32 %v40_v2, %v38_v0  ;;  %v42_v5 = vmul.f32 %v40_v2, %v39_v1 }
  0x1b   :  { %v44_v6 = vmul.f32 %v43_v3, %v38_v0  ;;  %v45_v7 = vmul.f32 %v43_v3, %v39_v1  ;;  %v56_v10 = vstv %s105_s18  ;;  %p156_p9 = pnand %p155_p8, %p149_p5 }
  0x1d   :  { %v106_v8 = vrot.slane %v44_v6, 9  ;;  %v107_v9 = vrot.slane %v45_v7, 9 }
  0x1f   :  { %v54_v11 = vadd.f32 %v106_v8, %v41_v4  ;;  %v55_v12 = vadd.f32 %v107_v9, %v42_v5 }
  0x21   :  { %v57_v13 = vadd.f32 %v56_v10, %v54_v11  ;;  %v58_v14 = vadd.f32 %v56_v10, %v55_v12 }
  0x23   :  { %v59_v15 = vsub.f32 0.0, %v57_v13  ;;  %v60_v16 = vsub.f32 0.0, %v58_v14 }
  0x25   :  { %v61_v17 = vmul.f32 1.442695, %v59_v15  ;;  %v63_v18 = vmul.f32 1.442695, %v60_v16 }
  0x27   :  { %112 = vpow2.f32 %v61_v17 }
  0x28   :  { %114 = vpow2.f32 %v63_v18 }
  0x34   :  { %v113_v19 = vpop.eup %112 }
  0x35   :  { %v115_v20 = vpop.eup %114  ;;  %v65_v21 = vadd.f32 1.0, %v113_v19 }
  0x36   :  { %v66_v22 = vadd.f32 1.0, %v115_v20 }
  0x37   :  { %116 = vrcp.f32 %v65_v21 }
  0x38   :  { %118 = vrcp.f32 %v66_v22 }
  0x44   :  { %v117_v29 = vpop.eup %116 }
  0x45   :  { %v119_v30 = vpop.eup %118  ;;  %v77_v31 = vrot.slane %v117_v29, %v76_v28 }
  0x46   :  { %v84_v32 = vrot.slane %v119_v30, %v76_v28 }
  0x48   :  { %v85_v33 = vcombine.low %v77_v31, %v84_v32 }
  0x4a   :  { %87 = vst [vmem:[#allocation7] sm:$0xff] %v85_v33 }
  0x4b   :  { %159 = shalt.err (!%p156_p9)
}
  0x4c   :  { %97 = dma.vmem_to_hbm [thread:$0]  %s95_s19, 128, %s204_s2, [#allocation4]  }
  0x4d   :  { %172 = dma.done.wait [#allocation4], 128  }
  0x4e   :  { %173 = vsyncadd [#allocation4], 4294967168 }
  0x4f   :  { %101 = vsyncpa [#allocation3], 1 }
  0x50   :  { %102 = vsyncpa [#allocation4], 1 }
  0x51   :  { %103 = vsyncpa [#allocation5], 1 }

</bundles_post_ra>
